<compile_context>
chip_gen: v6e
topology: v6e:2x2x1
jax: 0.10.0
libtpu: 0.0.40
codegen_flags: <defaults>
</compile_context>

<pallas_src>
import functools

import jax
import jax.numpy as jnp
from jax import lax
from jax.experimental import pallas as pl
from jax.experimental.pallas import tpu as pltpu

_BN_EPS = 1e-5
_LANE = 128


def _round_up(x, m):
    return (x + m - 1) // m * m


# ----------------------------- roll sign probe ------------------------------
# The kernels need "shift the lane axis LEFT by s" (result[r] = x[r + s]).
# Probe pltpu.roll's sign convention once with a tiny kernel so all conv/pool
# shifts are generated with the correct direction regardless of convention.

_ROLL_SIGN = None


def _roll_sign():
    global _ROLL_SIGN
    if _ROLL_SIGN is None:
        def kern(x_ref, o_ref):
            o_ref[...] = pltpu.roll(x_ref[...], 1, axis=1)

        x = jnp.arange(2 * 256, dtype=jnp.float32).reshape(2, 256)
        y = pl.pallas_call(
            kern, out_shape=jax.ShapeDtypeStruct((2, 256), jnp.float32))(x)
        # +1 -> a positive shift already rolls left; -1 -> jnp.roll convention.
        _ROLL_SIGN = 1 if bool(jnp.allclose(y, jnp.roll(x, -1, axis=1))) else -1
    return _ROLL_SIGN


# ----------------------------- geometry helpers -----------------------------

def _conv_geometry(h, w, k, stride, pad):
    oh = (h + 2 * pad - k) // stride + 1
    ow = (w + 2 * pad - k) // stride + 1
    hq = -(-(h + 2 * pad) // stride)          # ceil((H + 2p) / s)
    wq = -(-(w + 2 * pad) // stride)
    lp = _round_up(hq * wq, _LANE)            # lane-dense flattened spatial
    return oh, ow, hq, wq, lp


def _phase_planes(x, k, stride, pad, pad_value):
    """NCHW -> (N, stride*stride, C, Lp): phase-decimated flattened planes.

    Plane (pi, pj), flat position y*Wq + x  ==  padded_input[y*s+pi, x*s+pj].
    One single pass over the input (replaces the 9x / 49x im2col blow-up).
    """
    n, c, h, w = x.shape
    oh, ow, hq, wq, lp = _conv_geometry(h, w, k, stride, pad)
    xp = jnp.pad(
        x,
        ((0, 0), (0, 0),
         (pad, hq * stride - (h + pad)),
         (pad, wq * stride - (w + pad))),
        constant_values=pad_value)
    xp = xp.reshape(n, c, hq, stride, wq, stride)
    xp = jnp.transpose(xp, (0, 3, 5, 1, 2, 4))        # (n, pi, pj, c, hq, wq)
    xp = xp.reshape(n, stride * stride, c, hq * wq)
    xp = jnp.pad(xp, ((0, 0), (0, 0), (0, 0), (0, lp - hq * wq)),
                 constant_values=pad_value)
    return xp, (oh, ow, hq, wq, lp)


def _taps(k, stride, wq, lp):
    """Per-tap (phase index, lane-roll amount) for the in-kernel K*K loop."""
    sgn = _roll_sign()
    taps = []
    for i in range(k):
        for j in range(k):
            qi, pi = divmod(i, stride)
            qj, pj = divmod(j, stride)
            shift = qi * wq + qj               # desired left-shift of lanes
            taps.append((pi * stride + pj, (sgn * shift) % lp))
    return tuple(taps)


# ------------------------------ Pallas kernels ------------------------------

def _conv_bn_kernel(*refs, taps, relu, has_residual):
    """One (batch, Cout-tile, Cin-tile) grid step of conv+BN(+res)(+ReLU).

    x_ref   : (1, S*S, ck, Lp)  bf16  phase planes (flattened spatial = lanes)
    w_ref   : (K*K, tn, ck)     bf16  per-tap weights, BN scale pre-folded
    b_ref   : (tn, 1)           f32   BN bias
    [r_ref] : (1, tn, Lp)       bf16  residual (padded-flat layout)
    o_ref   : (1, tn, Lp)       bf16
    acc_ref : (tn, Lp)          f32   VMEM scratch accumulator
    """
    if has_residual:
        x_ref, w_ref, b_ref, r_ref, o_ref, acc_ref = refs
    else:
        x_ref, w_ref, b_ref, o_ref, acc_ref = refs

    k_step = pl.program_id(2)

    @pl.when(k_step == 0)
    def _():
        acc_ref[...] = jnp.zeros_like(acc_ref)

    acc = acc_ref[...]
    for t, (phase, roll_amt) in enumerate(taps):
        prod = jnp.dot(w_ref[t], x_ref[0, phase],
                       preferred_element_type=jnp.float32)
        if roll_amt:
            prod = pltpu.roll(prod, roll_amt, axis=1)   # XLU, ~free slot
        acc = acc + prod
    acc_ref[...] = acc

    @pl.when(k_step == pl.num_programs(2) - 1)
    def _():
        out = acc + b_ref[...]
        if has_residual:
            out = out + r_ref[0].astype(jnp.float32)
        if relu:
            out = jnp.maximum(out, 0.0)
        o_ref[0] = out.astype(o_ref.dtype)


def _maxpool_kernel(x_ref, o_ref, *, taps):
    """3x3 / stride-2 max pool over shifted phase planes (no stacked windows)."""
    acc = jnp.full(o_ref.shape[1:], -jnp.inf, dtype=jnp.float32)
    for phase, roll_amt in taps:
        v = x_ref[0, phase].astype(jnp.float32)
        if roll_amt:
            v = pltpu.roll(v, roll_amt, axis=1)
        acc = jnp.maximum(acc, v)
    o_ref[0] = acc.astype(o_ref.dtype)


# ------------------------------ op wrappers ---------------------------------

def conv_bn(x, w, bn, *, stride, pad, relu, residual=None):
    """Fused Conv2d + eval-mode BatchNorm (+ residual add) (+ ReLU).

    x: (N, Cin, H, W); w: (Cout, Cin, K, K) (PyTorch layout); bn=(g, b, mu, var).
    Returns (N, Cout, OH, OW) in bfloat16.
    """
    n, cin, h, _ = x.shape
    cout, _, k, _ = w.shape

    gamma, beta, mean, var = bn
    scale = gamma / jnp.sqrt(var + _BN_EPS)
    bias = (beta - mean * scale).astype(jnp.float32).reshape(cout, 1)

    # Sublane-align the contraction dim (only matters for the 3-channel stem).
    cin_p = _round_up(cin, 8)
    if cin_p != cin:
        x = jnp.pad(x, ((0, 0), (0, cin_p - cin), (0, 0), (0, 0)))
        w = jnp.pad(w, ((0, 0), (0, cin_p - cin), (0, 0), (0, 0)))

    # (K*K, Cout, Cin) per-tap weights with the BN scale folded in, in bf16.
    wk = jnp.transpose(w, (2, 3, 0, 1)).reshape(k * k, cout, cin_p)
    wk = (wk * scale.reshape(1, cout, 1)).astype(jnp.bfloat16)

    xs, (oh, ow, hq, wq, lp) = _phase_planes(x, k, stride, pad, 0.0)
    xs = xs.astype(jnp.bfloat16)
    taps = _taps(k, stride, wq, lp)

    # Channel tiles; the (>=128, lane-dense) flattened spatial axis is kept
    # whole per batch element at these sizes.  All blocks are far below the
    # v7x 64 MiB physical VMEM, so no vmem_limit_bytes override is needed.
    tn = cout if cout <= 256 else 256
    ck = cin_p if cin_p <= 256 else 256
    grid = (n, cout // tn, cin_p // ck)

    in_specs = [
        pl.BlockSpec((1, stride * stride, ck, lp),
                     lambda b, co, c: (b, 0, c, 0)),
        pl.BlockSpec((k * k, tn, ck), lambda b, co, c: (0, co, c)),
        pl.BlockSpec((tn, 1), lambda b, co, c: (co, 0)),
    ]
    args = [xs, wk, bias]
    if residual is not None:
        # Residual in the same padded-flat layout so the add+ReLU stay fused.
        r = jnp.pad(residual.astype(jnp.bfloat16),
                    ((0, 0), (0, 0), (0, hq - oh), (0, wq - ow)))
        r = r.reshape(n, cout, hq * wq)
        r = jnp.pad(r, ((0, 0), (0, 0), (0, lp - hq * wq)))
        in_specs.append(pl.BlockSpec((1, tn, lp), lambda b, co, c: (b, co, 0)))
        args.append(r)

    kernel = functools.partial(_conv_bn_kernel, taps=taps, relu=relu,
                               has_residual=residual is not None)
    out = pl.pallas_call(
        kernel,
        out_shape=jax.ShapeDtypeStruct((n, cout, lp), jnp.bfloat16),
        grid=grid,
        in_specs=in_specs,
        out_specs=pl.BlockSpec((1, tn, lp), lambda b, co, c: (b, co, 0)),
        scratch_shapes=[pltpu.VMEM((tn, lp), jnp.float32)],
        compiler_params=pltpu.CompilerParams(
            dimension_semantics=("parallel", "parallel", "arbitrary")),
    )(*args)

    out = out[:, :, :hq * wq].reshape(n, cout, hq, wq)
    return out[:, :, :oh, :ow]


def maxpool2d(x, ksize=3, stride=2, pad=1):
    n, c, _, _ = x.shape
    xs, (oh, ow, hq, wq, lp) = _phase_planes(x, ksize, stride, pad, -jnp.inf)
    xs = xs.astype(jnp.bfloat16)
    taps = _taps(ksize, stride, wq, lp)
    out = pl.pallas_call(
        functools.partial(_maxpool_kernel, taps=taps),
        out_shape=jax.ShapeDtypeStruct((n, c, lp), jnp.bfloat16),
        grid=(n,),
        in_specs=[pl.BlockSpec((1, stride * stride, c, lp),
                               lambda b: (b, 0, 0, 0))],
        out_specs=pl.BlockSpec((1, c, lp), lambda b: (b, 0, 0)),
        compiler_params=pltpu.CompilerParams(
            dimension_semantics=("parallel",)),
    )(xs)
    out = out[:, :, :hq * wq].reshape(n, c, hq, wq)
    return out[:, :, :oh, :ow]


def global_avgpool(x):
    # AdaptiveAvgPool2d((1,1)): trivial reduction, left to plain XLA (review).
    return jnp.mean(x.astype(jnp.float32), axis=(2, 3))


# ------------------------------ ResNet-18 body ------------------------------

def basic_block(x, block):
    stride = block['stride']
    identity = x
    h = conv_bn(x, block['conv1'], block['bn1'], stride=stride, pad=1, relu=True)
    if 'down_conv' in block:
        identity = conv_bn(x, block['down_conv'], block['down_bn'],
                           stride=stride, pad=0, relu=False)
    return conv_bn(h, block['conv2'], block['bn2'], stride=1, pad=1, relu=True,
                   residual=identity)


def encoder_cnn_forward(params, images_nchw):
    x = conv_bn(images_nchw, params['conv1'], params['bn1'],
                stride=2, pad=3, relu=True)
    x = maxpool2d(x, 3, 2, 1)
    for blocks in params['layers']:
        for block in blocks:
            x = basic_block(x, block)
    feats = global_avgpool(x)                         # (N, 512) f32
    return feats.reshape(feats.shape[0], 512, 1, 1)   # == nn.Sequential(*resnet18[:-1])


# --------------------------- deterministic init -----------------------------

def _conv_init(key, cout, cin, kh, kw):
    fan_in = cin * kh * kw
    std = (2.0 / fan_in) ** 0.5
    return std * jax.random.normal(key, (cout, cin, kh, kw), jnp.float32)


def _bn_init(key, c):
    k1, k2, k3, k4 = jax.random.split(key, 4)
    gamma = 1.0 + 0.1 * jax.random.normal(k1, (c,), jnp.float32)
    beta = 0.1 * jax.random.normal(k2, (c,), jnp.float32)
    mean = 0.1 * jax.random.normal(k3, (c,), jnp.float32)
    var = 1.0 + 0.1 * jax.random.uniform(k4, (c,), jnp.float32)
    return gamma, beta, mean, var


def init_encoder_params(key):
    keys = iter(jax.random.split(key, 256))
    params = {
        'conv1': _conv_init(next(keys), 64, 3, 7, 7),
        'bn1': _bn_init(next(keys), 64),
    }
    stage_channels = [(64, 64), (64, 128), (128, 256), (256, 512)]
    layers = []
    for s, (cin, cout) in enumerate(stage_channels):
        blocks = []
        for b in range(2):
            in_c = cin if b == 0 else cout
            stride = 2 if (b == 0 and s > 0) else 1
            block = {
                'conv1': _conv_init(next(keys), cout, in_c, 3, 3),
                'bn1': _bn_init(next(keys), cout),
                'conv2': _conv_init(next(keys), cout, cout, 3, 3),
                'bn2': _bn_init(next(keys), cout),
                'stride': stride,
            }
            if stride != 1 or in_c != cout:
                block['down_conv'] = _conv_init(next(keys), cout, in_c, 1, 1)
                block['down_bn'] = _bn_init(next(keys), cout)
            blocks.append(block)
        layers.append(blocks)
    params['layers'] = layers
    return params


# ----------------------------- self-checks -----------------------------------

def _conv_bn_ref(x, w, bn, *, stride, pad, relu, residual=None):
    """Pure-XLA f32 reference used for numerical self-checks."""
    gamma, beta, mean, var = bn
    scale = gamma / jnp.sqrt(var + _BN_EPS)
    bias = beta - mean * scale
    y = lax.conv_general_dilated(
        x.astype(jnp.float32), w.astype(jnp.float32),
        window_strides=(stride, stride),
        padding=((pad, pad), (pad, pad)),
        dimension_numbers=('NCHW', 'OIHW', 'NCHW'))
    y = y * scale.reshape(1, -1, 1, 1) + bias.reshape(1, -1, 1, 1)
    if residual is not None:
        y = y + residual.astype(jnp.float32)
    if relu:
        y = jnp.maximum(y, 0.0)
    return y


def _self_check(key):
    """Check the Pallas conv/pool kernels against pure-XLA references."""
    configs = [
        # (cin, cout, k, stride, pad, h, relu, with_residual)
        (3, 64, 7, 2, 3, 32, True, False),     # stem 7x7/2
        (64, 64, 3, 1, 1, 8, True, True),      # BasicBlock conv2 + residual
        (64, 128, 3, 2, 1, 8, True, False),    # strided 3x3
        (64, 128, 1, 2, 0, 8, False, False),   # 1x1 downsample
        (512, 512, 3, 1, 1, 1, True, True),    # wide conv (K grid axis)
    ]
    for idx, (cin, cout, k, s, p, h, relu, use_res) in enumerate(configs):
        ka, kb, kc, kd = jax.random.split(jax.random.fold_in(key, idx), 4)
        x = jax.random.normal(ka, (2, cin, h, h), jnp.float32)
        w = _conv_init(kb, cout, cin, k, k)
        bn = _bn_init(kc, cout)
        oh = (h + 2 * p - k) // s + 1
        res = (jax.random.normal(kd, (2, cout, oh, oh), jnp.float32)
               if use_res else None)
        got = conv_bn(x, w, bn, stride=s, pad=p, relu=relu,
                      residual=res).astype(jnp.float32)
        want = _conv_bn_ref(x, w, bn, stride=s, pad=p, relu=relu, residual=res)
        assert got.shape == want.shape, (got.shape, want.shape)
        assert bool(jnp.allclose(got, want, atol=0.1, rtol=0.1)), (
            f"conv_bn kernel mismatch for config {configs[idx]}")

    kx = jax.random.fold_in(key, 1000)
    x = jax.random.normal(kx, (2, 64, 16, 16), jnp.float32).astype(jnp.bfloat16)
    got = maxpool2d(x).astype(jnp.float32)
    want = lax.reduce_window(x.astype(jnp.float32), -jnp.inf, lax.max,
                             (1, 1, 3, 3), (1, 1, 2, 2),
                             ((0, 0), (0, 0), (1, 1), (1, 1)))
    assert bool(jnp.allclose(got, want, atol=1e-2, rtol=1e-2)), "maxpool mismatch"


# ----------------------------------- main ------------------------------------

if __name__ == "__main__":
    root = jax.random.PRNGKey(0)
    pkey, xkey, ckey = jax.random.split(root, 3)

    # Numerical self-check of the Pallas kernels against XLA references.
    _self_check(ckey)

    params = init_encoder_params(pkey)
    # ResNet conv1 requires 3 input channels; 32x32 spatial keeps it small.
    images = jax.random.normal(xkey, (2, 3, 32, 32), jnp.float32)  # NCHW
    out = encoder_cnn_forward(params, images)
    out = jax.block_until_ready(out)
    assert out.shape == (2, 512, 1, 1), out.shape
    assert bool(jnp.all(jnp.isfinite(out)))
    print("KERNEL_OK")
</pallas_src>

<mosaic_0001>
module attributes {stable_mosaic.version = 11 : i64} {
  func.func @kern(%arg0: memref<2x256xf32, #tpu.memory_space<vmem>>, %arg1: memref<2x256xf32, #tpu.memory_space<vmem>>) attributes {dimension_semantics = [], scalar_prefetch = 0 : i64, scratch_operands = 0 : i64, tpu.core_type = #tpu.core_type<tc>} {
    %c0 = arith.constant 0 : index
    %c0_0 = arith.constant 0 : index
    %0 = vector.load %arg0[%c0, %c0_0] : memref<2x256xf32, #tpu.memory_space<vmem>>, vector<2x256xf32>
    %c1_i32 = arith.constant 1 : i32
    %1 = tpu.dynamic_rotate %0 by %c1_i32 dim 1 : vector<2x256xf32>, i32 -> vector<2x256xf32>
    %c0_1 = arith.constant 0 : index
    %c0_2 = arith.constant 0 : index
    %2 = vector.load %arg1[%c0_1, %c0_2] : memref<2x256xf32, #tpu.memory_space<vmem>>, vector<2x256xf32>
    tpu.vector_store %arg1[%c0_1, %c0_2], %1 {strides = array<i32>} : memref<2x256xf32, #tpu.memory_space<vmem>>, vector<2x256xf32>,
    return
  }
}

</mosaic_0001>

<bundles_post_ra>
// kernel: tpu_custom_call.1
= control target key start
LH: loop header
LB: loop body
LE: loop exit
PB: predicated region body
PF: predicated region fallthrough
CT: control target
= control target key end

     0   :  { %6 = vsyncpa [#allocation3], 0  ;;  %s137_s0 = inlined_call_operand.hbm [shape: f32[2,256], index: 0, kind: input, shape index: {}]   ;;  %s138_s1 = inlined_call_operand.hbm [shape: f32[2,256], index: 1, kind: output, shape index: {}]  }
   0x1   :  { %7 = vsyncpa [#allocation4], 0  ;;  %s118_s6 = smov [#allocation2]  }
   0x2   :  { %s14_s7 = sshll.u32 %s118_s6, 4  ;;  %s15_s7 = int_to_ptr.vmem [resolvable:$true] %s14_s7 }
   0x3   :  { %s82_s8 = scalar_lea.vmem %s15_s7, 64  ;;  %p87_p1 = scmp.lt.s32.totalorder %s15_s7, %s15_s7 }
   0x4   :  { %p83_p0 = scmp.ne.s32.totalorder %s15_s7, %s82_s8  ;;  %p88_p2 = scmp.lt.s32.totalorder %s82_s8, %s82_s8 }
   0x6   :  { %p89_p3 = por %p88_p2, %p87_p1 }
   0x8   :  { %p90_p4 = pnand %p89_p3, %p83_p0 }
   0xa   :  { %93 = shalt.err (!%p90_p4)
}
   0xb   :  { %17 = dma.hbm_to_vmem [thread:$0]  %s137_s0, 64, %s15_s7, [#allocation3]  }
   0xc   :  { %114 = dma.done.wait [#allocation3], 64  }
   0xd   :  { %115 = vsyncadd [#allocation3], 4294967232  ;;  %v69_v0 = vld.sshfl [vmem:[#allocation2] sm:$0x33 pattern:$0x76325410]  ;;  %v37_v2 = vlaneseq }
   0xe   :  { %s119_s11 = smov 1   ;;  %v30_v1 = vcombine.high %v69_v0, %v69_v0  ;;  %s120_s12 = smov [#allocation5]  }
   0xf   :  { %33 = vrot.lane.b32.xlu0 %v69_v0, %s119_s11  ;;  %v38_v3 = vand.u32 127, %v37_v2  ;;  %s60_s13 = sshll.u32 %s120_s12, 4  ;;  %s61_s13 = int_to_ptr.vmem [resolvable:$true] %s60_s13 }
  0x10   :  { %s94_s0 = scalar_lea.vmem %s61_s13, 64  ;;  %p99_p6 = scmp.lt.s32.totalorder %s61_s13, %s61_s13 }
  0x11   :  { %vm39_vm0 = vcmp.lt.s32.totalorder %v38_v3, 1  ;;  %p95_p5 = scmp.ne.s32.totalorder %s61_s13, %s94_s0  ;;  %p100_p7 = scmp.lt.s32.totalorder %s94_s0, %s94_s0 }
  0x13   :  { %35 = vrot.lane.b32.xlu0 %v30_v1, %s119_s11  ;;  %p101_p8 = por %p100_p7, %p99_p6 }
  0x15   :  { %p102_p9 = pnand %p101_p8, %p95_p5 }
  0x81   :  { %v34_v4 = vpop.permute.xlu0 %33 }
  0x85   :  { %v36_v5 = vpop.permute.xlu0 %35 }
  0x86   :  { %v40_v6 = vsel %vm39_vm0, %v34_v4, %v36_v5  ;;  %v41_v7 = vsel %vm39_vm0, %v36_v5, %v34_v4 }
  0x87   :  { %v44_v8 = vcombine.low %v41_v7, %v40_v6 }
  0x89   :  { %70 = vst.sshfl [vmem:[#allocation5] sm:$0x33 pattern:$0x76325410] %v44_v8 }
  0x8a   :  { %105 = shalt.err (!%p102_p9)
}
  0x8b   :  { %63 = dma.vmem_to_hbm [thread:$0]  %s61_s13, 64, %s138_s1, [#allocation4]  }
  0x8c   :  { %116 = dma.done.wait [#allocation4], 64  }
  0x8d   :  { %117 = vsyncadd [#allocation4], 4294967232 }
  0x8e   :  { %67 = vsyncpa [#allocation3], 1 }
  0x8f   :  { %68 = vsyncpa [#allocation4], 1 }

</bundles_post_ra>
